<compile_context>
chip_gen: v7x
topology: tpu7x:2x2x1
jax: 0.10.0
libtpu: 0.0.40
codegen_flags: <defaults>
</compile_context>

<pallas_src>
import jax
import jax.numpy as jnp
import numpy as np
from jax.experimental import pallas as pl
from jax.experimental.pallas import tpu as pltpu

BN_EPS = 1e-5


def _conv_stats_kernel(w_ref, patches_ref, raw_ref, stats_ref):
    # (Cout, K) @ (K, tm) -> (Cout, tm), fp32 accumulation on the MXU.
    acc = jnp.dot(w_ref[...], patches_ref[...],
                  preferred_element_type=jnp.float32)
    raw_ref[...] = acc
    # Per-channel partial statistics for this tile (single pass: sum & sumsq).
    s = jnp.sum(acc, axis=1, keepdims=True)          # (Cout, 1)
    ss = jnp.sum(acc * acc, axis=1, keepdims=True)   # (Cout, 1)
    stats_ref[...] = jnp.concatenate([s, ss], axis=1)[None]   # (1, Cout, 2)


def _bn_relu_kernel(scale_ref, shift_ref, raw_ref, out_ref):
    y = raw_ref[...] * scale_ref[...] + shift_ref[...]
    out_ref[...] = jnp.maximum(y, 0.0)


def _round_up(x, m):
    return (x + m - 1) // m * m


@jax.jit
def conv_downsample(x_nchw, w_oihw, gamma, beta):
    """Fused Conv2d(k3,s2,p1,no bias) + BatchNorm2d(train) + ReLU.

    x_nchw : (N, Cin, H, W) float32
    w_oihw : (Cout, Cin, 3, 3) float32
    gamma, beta : (Cout,) float32
    returns (N, Cout, H//2, W//2) float32
    """
    N, Cin, H, W = x_nchw.shape
    Cout = w_oihw.shape[0]
    Ho = (H + 2 - 3) // 2 + 1
    Wo = (W + 2 - 3) // 2 + 1
    M = N * Ho * Wo
    K = 9 * Cin

    # ---- glue: NCHW -> NHWC, pad, TRANSPOSED im2col (K, M) -----------------
    # TODO(synk): form the 9 conv taps in-kernel from the padded NHWC input
    # (strided pl.ds slices + 9 accumulating matmuls) to avoid materializing
    # this 2.25x-input-sized im2col slab in HBM.
    x_nhwc = jnp.transpose(x_nchw, (0, 2, 3, 1))
    xp = jnp.pad(x_nhwc, ((0, 0), (1, 1), (1, 1), (0, 0)))
    taps = [xp[:, kh:kh + 2 * Ho:2, kw:kw + 2 * Wo:2, :]
            for kh in range(3) for kw in range(3)]                 # 9 x (N,Ho,Wo,Cin)
    patches = jnp.stack(taps, axis=0)                              # (9,N,Ho,Wo,Cin)
    patches = jnp.transpose(patches, (0, 4, 1, 2, 3)).reshape(K, M)

    # Lane-dense M tiling.  Zero-padded columns give exactly-zero conv
    # outputs (no bias), so they contribute nothing to the BN sums; we still
    # divide by the true M, so the statistics stay exact.
    tm = min(512, _round_up(M, 128))
    Mp = _round_up(M, tm)
    num_tiles = Mp // tm
    patches = jnp.pad(patches, ((0, 0), (0, Mp - M))).astype(jnp.bfloat16)

    # Weight (Cout, Cin, kh, kw) -> (Cout, kh, kw, Cin) -> (Cout, 9*Cin),
    # matching the (kh, kw, Cin) ordering of the patches' K axis.
    w_flat = jnp.transpose(w_oihw, (0, 2, 3, 1)).reshape(Cout, K)
    w_flat = w_flat.astype(jnp.bfloat16)

    cparams = pltpu.CompilerParams(
        dimension_semantics=("parallel",),
        vmem_limit_bytes=32 * 1024 * 1024)

    # ---- pass 1: conv tiles + per-tile per-channel sum / sumsq -------------
    raw, stats = pl.pallas_call(
        _conv_stats_kernel,
        grid=(num_tiles,),
        in_specs=[
            pl.BlockSpec((Cout, K), lambda i: (0, 0)),        # weights (resident)
            pl.BlockSpec((K, tm), lambda i: (0, i)),          # patches tile
        ],
        out_specs=[
            pl.BlockSpec((Cout, tm), lambda i: (0, i)),       # raw conv tile
            pl.BlockSpec((1, Cout, 2), lambda i: (i, 0, 0)),  # per-tile stats
        ],
        out_shape=(
            jax.ShapeDtypeStruct((Cout, Mp), jnp.float32),
            jax.ShapeDtypeStruct((num_tiles, Cout, 2), jnp.float32),
        ),
        compiler_params=cparams,
    )(w_flat, patches)

    # ---- tiny JAX glue: fold partials into per-channel scale / shift -------
    tot = jnp.sum(stats, axis=0)                       # (Cout, 2)
    mean = tot[:, 0] / M
    var = jnp.maximum(tot[:, 1] / M - mean * mean, 0.0)
    inv_std = jax.lax.rsqrt(var + BN_EPS)
    g = gamma.astype(jnp.float32) * inv_std
    scale = g.reshape(Cout, 1)
    shift = (beta.astype(jnp.float32) - mean * g).reshape(Cout, 1)

    # ---- pass 2: lane-dense affine BN apply + ReLU --------------------------
    out = pl.pallas_call(
        _bn_relu_kernel,
        grid=(num_tiles,),
        in_specs=[
            pl.BlockSpec((Cout, 1), lambda i: (0, 0)),
            pl.BlockSpec((Cout, 1), lambda i: (0, 0)),
            pl.BlockSpec((Cout, tm), lambda i: (0, i)),
        ],
        out_specs=pl.BlockSpec((Cout, tm), lambda i: (0, i)),
        out_shape=jax.ShapeDtypeStruct((Cout, Mp), jnp.float32),
        compiler_params=cparams,
    )(scale, shift, raw)

    # (Cout, Mp) -> (Cout, M) -> (N, Cout, Ho, Wo)
    out = out[:, :M].reshape(Cout, N, Ho, Wo)
    return jnp.transpose(out, (1, 0, 2, 3))


def _reference(x_nchw, w_oihw, gamma, beta):
    y = jax.lax.conv_general_dilated(
        x_nchw, w_oihw, window_strides=(2, 2), padding=((1, 1), (1, 1)),
        dimension_numbers=("NCHW", "OIHW", "NCHW"))
    mean = jnp.mean(y, axis=(0, 2, 3), keepdims=True)
    var = jnp.mean((y - mean) ** 2, axis=(0, 2, 3), keepdims=True)
    yn = (y - mean) * jax.lax.rsqrt(var + BN_EPS)
    yn = yn * gamma.reshape(1, -1, 1, 1) + beta.reshape(1, -1, 1, 1)
    return jnp.maximum(yn, 0.0)


if __name__ == "__main__":
    key = jax.random.PRNGKey(0)
    k_x, k_w, k_g, k_b = jax.random.split(key, 4)

    # Module hardcodes BatchNorm2d(32), so channels = 32.
    N, C, H, W = 2, 32, 16, 16
    x = jax.random.normal(k_x, (N, C, H, W), dtype=jnp.float32)
    w = jax.random.normal(k_w, (C, C, 3, 3), dtype=jnp.float32) * 0.1
    gamma = 1.0 + 0.1 * jax.random.normal(k_g, (C,), dtype=jnp.float32)
    beta = 0.1 * jax.random.normal(k_b, (C,), dtype=jnp.float32)

    out = jax.block_until_ready(conv_downsample(x, w, gamma, beta))
    ref = jax.block_until_ready(_reference(x, w, gamma, beta))

    assert out.shape == (N, C, H // 2, W // 2), out.shape
    # bf16 matmul inputs (fp32 accumulation) -> slightly looser tolerance
    # than a pure-fp32 pipeline.
    np.testing.assert_allclose(np.asarray(out), np.asarray(ref),
                               rtol=2e-2, atol=3e-2)
    print("KERNEL_OK")
</pallas_src>

<mosaic_0001>
module attributes {stable_mosaic.version = 11 : i64} {
  func.func @_conv_stats_kernel(%arg0: i32, %arg1: memref<32x288xbf16, #tpu.memory_space<vmem>>, %arg2: memref<288x128xbf16, #tpu.memory_space<vmem>>, %arg3: memref<32x128xf32, #tpu.memory_space<vmem>>, %arg4: memref<1x32x2xf32, #tpu.memory_space<vmem>>) attributes {dimension_semantics = [#tpu.dimension_semantics<parallel>], iteration_bounds = array<i64: 1>, scalar_prefetch = 0 : i64, scratch_operands = 0 : i64, tpu.core_type = #tpu.core_type<tc>, window_params = [{pipeline_mode = #tpu.pipeline_mode<synchronous>, transform_indices = @transform_0, window_bounds = array<i64: 32, 288>}, {transform_indices = @transform_1, window_bounds = array<i64: 288, 128>}, {transform_indices = @transform_2, window_bounds = array<i64: 32, 128>}, {transform_indices = @transform_3, window_bounds = array<i64: 1, 32, 2>}]} {
    %c0 = arith.constant 0 : index
    %c0_0 = arith.constant 0 : index
    %0 = vector.load %arg1[%c0, %c0_0] : memref<32x288xbf16, #tpu.memory_space<vmem>>, vector<32x288xbf16>
    %c0_1 = arith.constant 0 : index
    %c0_2 = arith.constant 0 : index
    %1 = vector.load %arg2[%c0_1, %c0_2] : memref<288x128xbf16, #tpu.memory_space<vmem>>, vector<288x128xbf16>
    %cst = arith.constant dense<0.000000e+00> : vector<32x128xf32>
    %2 = tpu.matmul %0, %1, %cst {dimension_numbers = #tpu.dot_dimension_numbers<[1], [0], [0], [1], [0, 0, 1, 1], [], []>} : vector<32x288xbf16>, vector<288x128xbf16>, vector<32x128xf32> -> vector<32x128xf32>
    %c0_3 = arith.constant 0 : index
    %c0_4 = arith.constant 0 : index
    %3 = vector.load %arg3[%c0_3, %c0_4] : memref<32x128xf32, #tpu.memory_space<vmem>>, vector<32x128xf32>
    tpu.vector_store %arg3[%c0_3, %c0_4], %2 {strides = array<i32>} : memref<32x128xf32, #tpu.memory_space<vmem>>, vector<32x128xf32>,
    %cst_5 = arith.constant dense<0.000000e+00> : vector<32xf32>
    %4 = vector.multi_reduction <add>, %2, %cst_5 [1] : vector<32x128xf32> to vector<32xf32>
    %5 = vector.shape_cast %4 : vector<32xf32> to vector<32x1xf32>
    %6 = arith.mulf %2, %2 : vector<32x128xf32>
    %cst_6 = arith.constant dense<0.000000e+00> : vector<32xf32>
    %7 = vector.multi_reduction <add>, %6, %cst_6 [1] : vector<32x128xf32> to vector<32xf32>
    %8 = vector.shape_cast %7 : vector<32xf32> to vector<32x1xf32>
    %9 = tpu.concatenate %5, %8 in 1 : vector<32x1xf32>, vector<32x1xf32> -> vector<32x2xf32>
    %10 = vector.shape_cast %9 : vector<32x2xf32> to vector<1x32x2xf32>
    %c0_7 = arith.constant 0 : index
    %c0_8 = arith.constant 0 : index
    %c0_9 = arith.constant 0 : index
    %11 = vector.load %arg4[%c0_7, %c0_8, %c0_9] : memref<1x32x2xf32, #tpu.memory_space<vmem>>, vector<1x32x2xf32>
    tpu.vector_store %arg4[%c0_7, %c0_8, %c0_9], %10 {strides = array<i32>} : memref<1x32x2xf32, #tpu.memory_space<vmem>>, vector<1x32x2xf32>,
    return
  }
  func.func @transform_0(%arg0: i32) -> (i32, i32) {
    %c0_i32 = arith.constant 0 : i32
    %c0_i32_0 = arith.constant 0 : i32
    %c0_i32_1 = arith.constant 0 : i32
    return %c0_i32, %c0_i32_0 : i32, i32
  }
  func.func @transform_1(%arg0: i32) -> (i32, i32) {
    %c0_i32 = arith.constant 0 : i32
    %c0_i32_0 = arith.constant 0 : i32
    return %c0_i32, %arg0 : i32, i32
  }
  func.func @transform_2(%arg0: i32) -> (i32, i32) {
    %c0_i32 = arith.constant 0 : i32
    %c0_i32_0 = arith.constant 0 : i32
    return %c0_i32, %arg0 : i32, i32
  }
  func.func @transform_3(%arg0: i32) -> (i32, i32, i32) {
    %c0_i32 = arith.constant 0 : i32
    %c0_i32_0 = arith.constant 0 : i32
    %c0_i32_1 = arith.constant 0 : i32
    return %arg0, %c0_i32, %c0_i32_0 : i32, i32, i32
  }
}

module attributes {stable_mosaic.version = 11 : i64} {
  func.func @_bn_relu_kernel(%arg0: i32, %arg1: memref<32x1xf32, #tpu.memory_space<vmem>>, %arg2: memref<32x1xf32, #tpu.memory_space<vmem>>, %arg3: memref<32x128xf32, #tpu.memory_space<vmem>>, %arg4: memref<32x128xf32, #tpu.memory_space<vmem>>) attributes {dimension_semantics = [#tpu.dimension_semantics<parallel>], iteration_bounds = array<i64: 1>, scalar_prefetch = 0 : i64, scratch_operands = 0 : i64, tpu.core_type = #tpu.core_type<tc>, window_params = [{pipeline_mode = #tpu.pipeline_mode<synchronous>, transform_indices = @transform_0, window_bounds = array<i64: 32, 1>}, {pipeline_mode = #tpu.pipeline_mode<synchronous>, transform_indices = @transform_1, window_bounds = array<i64: 32, 1>}, {transform_indices = @transform_2, window_bounds = array<i64: 32, 128>}, {transform_indices = @transform_3, window_bounds = array<i64: 32, 128>}]} {
    %c0 = arith.constant 0 : index
    %c0_0 = arith.constant 0 : index
    %0 = vector.load %arg3[%c0, %c0_0] : memref<32x128xf32, #tpu.memory_space<vmem>>, vector<32x128xf32>
    %c0_1 = arith.constant 0 : index
    %c0_2 = arith.constant 0 : index
    %1 = vector.load %arg1[%c0_1, %c0_2] : memref<32x1xf32, #tpu.memory_space<vmem>>, vector<32x1xf32>
    %2 = vector.broadcast %1 : vector<32x1xf32> to vector<32x128xf32>
    %3 = arith.mulf %0, %2 : vector<32x128xf32>
    %c0_3 = arith.constant 0 : index
    %c0_4 = arith.constant 0 : index
    %4 = vector.load %arg2[%c0_3, %c0_4] : memref<32x1xf32, #tpu.memory_space<vmem>>, vector<32x1xf32>
    %5 = vector.broadcast %4 : vector<32x1xf32> to vector<32x128xf32>
    %6 = arith.addf %3, %5 : vector<32x128xf32>
    %cst = arith.constant 0.000000e+00 : f32
    %7 = vector.broadcast %cst : f32 to vector<32x128xf32>
    %8 = arith.maximumf %6, %7 : vector<32x128xf32>
    %c0_5 = arith.constant 0 : index
    %c0_6 = arith.constant 0 : index
    %9 = vector.load %arg4[%c0_5, %c0_6] : memref<32x128xf32, #tpu.memory_space<vmem>>, vector<32x128xf32>
    tpu.vector_store %arg4[%c0_5, %c0_6], %8 {strides = array<i32>} : memref<32x128xf32, #tpu.memory_space<vmem>>, vector<32x128xf32>,
    return
  }
  func.func @transform_0(%arg0: i32) -> (i32, i32) {
    %c0_i32 = arith.constant 0 : i32
    %c0_i32_0 = arith.constant 0 : i32
    %c0_i32_1 = arith.constant 0 : i32
    return %c0_i32, %c0_i32_0 : i32, i32
  }
  func.func @transform_1(%arg0: i32) -> (i32, i32) {
    %c0_i32 = arith.constant 0 : i32
    %c0_i32_0 = arith.constant 0 : i32
    %c0_i32_1 = arith.constant 0 : i32
    return %c0_i32, %c0_i32_0 : i32, i32
  }
  func.func @transform_2(%arg0: i32) -> (i32, i32) {
    %c0_i32 = arith.constant 0 : i32
    %c0_i32_0 = arith.constant 0 : i32
    return %c0_i32, %arg0 : i32, i32
  }
  func.func @transform_3(%arg0: i32) -> (i32, i32) {
    %c0_i32 = arith.constant 0 : i32
    %c0_i32_0 = arith.constant 0 : i32
    return %c0_i32, %arg0 : i32, i32
  }
}

</mosaic_0001>

<bundles_post_ra>
// kernel: conv_downsample.3
= control target key start
LH: loop header
LB: loop body
LE: loop exit
PB: predicated region body
PF: predicated region fallthrough
CT: control target
= control target key end

     0   :  { %v89_v0 = vmov 0   ;;  %s158_s0 = inlined_call_operand.vmem [shape: f32[32,1], index: 0, kind: input, shape index: {}]   ;;  %s159_s1 = inlined_call_operand.vmem [shape: f32[32,1], index: 1, kind: input, shape index: {}]   ;;  %s160_s2 = inlined_call_operand.vmem [shape: f32[32,128], index: 2, kind: input, shape index: {}]   ;;  %s161_s3 = inlined_call_operand.vmem [shape: f32[32,128], index: 3, kind: output, shape index: {}]  }
   0x1   :  { %88 = vset.pattern.permute.xlu1 %v89_v0  ;;  %87 = vset.pattern.permute.xlu0 %v89_v0  ;;  %v20_v1 = vld [vmem:[%s158_s0 + $0x10] sm:$0xff]  ;;  %v18_v2 = vld [vmem:[%s158_s0] sm:$0xff]  ;;  %v21_v3 = vld [vmem:[%s158_s0 + $0x18] sm:$0xff] }
   0x2   :  { %34 = vperm.xlu1 %88, %v20_v1   ;;  %24 = vperm.xlu0 %87, %v18_v2   ;;  %v19_v4 = vld [vmem:[%s158_s0 + $0x8] sm:$0xff]  ;;  %v46_v6 = vld [vmem:[%s159_s1] sm:$0xff]  ;;  %v49_v7 = vld [vmem:[%s159_s1 + $0x18] sm:$0xff] }
   0x3   :  { %v47_v5 = vld [vmem:[%s159_s1 + $0x8] sm:$0xff]  ;;  %v48_v8 = vld [vmem:[%s159_s1 + $0x10] sm:$0xff]  ;;  %v14_v11 = vld [vmem:[%s160_s2] sm:$0xff] }
   0x4   :  { %v15_v13 = vld [vmem:[%s160_s2 + $0x8] sm:$0xff]  ;;  %v16_v17 = vld [vmem:[%s160_s2 + $0x10] sm:$0xff]  ;;  %v17_v18 = vld [vmem:[%s160_s2 + $0x18] sm:$0xff] }
   0x6   :  { %39 = vperm.xlu1 %88, %v21_v3   ;;  %29 = vperm.xlu0 %87, %v19_v4  }
   0xa   :  { %57 = vperm.xlu1 %88, %v47_v5   ;;  %52 = vperm.xlu0 %87, %v46_v6  }
   0xe   :  { %67 = vperm.xlu1 %88, %v49_v7   ;;  %62 = vperm.xlu0 %87, %v48_v8  }
  0x81   :  { %v35_v9 = vpop.permute.xlu1 %34  ;;  %v25_v10 = vpop.permute.xlu0 %24 }
  0x82   :  { %v42_v15 = vmul.f32 %v25_v10, %v14_v11  ;;  %v44_v23 = vmul.f32 %v35_v9, %v16_v17 }
  0x85   :  { %v40_v12 = vpop.permute.xlu1 %39  ;;  %v30_v14 = vpop.permute.xlu0 %29 }
  0x86   :  { %v43_v16 = vmul.f32 %v30_v14, %v15_v13  ;;  %v45_v24 = vmul.f32 %v40_v12, %v17_v18 }
  0x89   :  { %v58_v19 = vpop.permute.xlu1 %57  ;;  %v53_v20 = vpop.permute.xlu0 %52 }
  0x8a   :  { %v71_v21 = vadd.f32 %v58_v19, %v43_v16  ;;  %v70_v22 = vadd.f32 %v53_v20, %v42_v15 }
  0x8c   :  { %v75_v25 = vmax.f32 %v71_v21, 0.0  ;;  %v74_v26 = vmax.f32 %v70_v22, 0.0 }
  0x8d   :  { %v68_v27 = vpop.permute.xlu1 %67  ;;  %v63_v28 = vpop.permute.xlu0 %62 }
  0x8e   :  { %79 = vst [vmem:[%s161_s3 + $0x8] sm:$0xff] %v75_v25  ;;  %78 = vst [vmem:[%s161_s3] sm:$0xff] %v74_v26  ;;  %v73_v29 = vadd.f32 %v68_v27, %v45_v24  ;;  %v72_v30 = vadd.f32 %v63_v28, %v44_v23 }
  0x90   :  { %v77_v31 = vmax.f32 %v73_v29, 0.0  ;;  %v76_v32 = vmax.f32 %v72_v30, 0.0 }
  0x92   :  { %81 = vst [vmem:[%s161_s3 + $0x18] sm:$0xff] %v77_v31  ;;  %80 = vst [vmem:[%s161_s3 + $0x10] sm:$0xff] %v76_v32 }

// kernel: conv_downsample.2
= control target key start
LH: loop header
LB: loop body
LE: loop exit
PB: predicated region body
PF: predicated region fallthrough
CT: control target
= control target key end

     0   :  { %vm196_vm0 = vcmask 261120   ;;  %vm325_vm1 = vcmask 7168   ;;  %vm330_vm2 = vcmask 15360   ;;  %s555_s1 = inlined_call_operand.vmem [shape: bf16[288,128], index: 1, kind: input, shape index: {}]   ;;  %s556_s0 = inlined_call_operand.vmem [shape: bf16[32,288], index: 0, kind: input, shape index: {}]   ;;  %s557_s2 = inlined_call_operand.vmem [shape: f32[32,128], index: 2, kind: output, shape index: {0}]   ;;  %s558_s3 = inlined_call_operand.vmem [shape: f32[1,32,2], index: 3, kind: output, shape index: {1}]  }
   0x1   :  { %v409_v0 = vld [vmem:[%s555_s1 + $0x40] sm:$0xff]   ;;  %v411_v2 = vld [vmem:[%s555_s1 + $0x48] sm:$0xff]   ;;  %v413_v4 = vld [vmem:[%s555_s1 + $0x50] sm:$0xff]  }
   0x2   :  { %v410_v1 = vld [vmem:[%s555_s1] sm:$0xff]   ;;  %369 = vmatprep.subr.bf16.mxu0 %v409_v0  ;;  %v412_v3 = vld [vmem:[%s555_s1 + $0x8] sm:$0xff]   ;;  %v414_v5 = vld [vmem:[%s555_s1 + $0x10] sm:$0xff]  }
   0x3   :  { %370 = vmatpush3.bf16.msra.mxu0 %v410_v1  ;;  %v415_v6 = vld [vmem:[%s555_s1 + $0x58] sm:$0xff]   ;;  %v417_v8 = vld [vmem:[%s555_s1 + $0x60] sm:$0xff]   ;;  %v424_v11 = vld [vmem:[%s555_s1 + $0x88] sm:$0xff]  }
   0x4   :  { %371 = vmatprep.subr.bf16.mxu0 %v411_v2  ;;  %v416_v7 = vld [vmem:[%s555_s1 + $0x18] sm:$0xff]   ;;  %v421_v9 = vld [vmem:[%s555_s1 + $0x80] sm:$0xff]   ;;  %v419_v12 = vld [vmem:[%s555_s1 + $0x68] sm:$0xff]  }
   0x5   :  { %v418_v10 = vld [vmem:[%s555_s1 + $0x20] sm:$0xff]   ;;  %401 = vmatprep.subr.bf16.mxu1 %v421_v9  ;;  %v420_v13 = vld [vmem:[%s555_s1 + $0x28] sm:$0xff]   ;;  %v422_v15 = vld [vmem:[%s555_s1 + $0x70] sm:$0xff]  }
   0x6   :  { %402 = vmatpush3.bf16.msra.mxu1 %v421_v9  ;;  %v427_v14 = vld [vmem:[%s556_s0 + $0x8] ss:$12 sps:$4 sm:$0xff]   ;;  %v430_v16 = vld [vmem:[%s556_s0 + $0x4] ss:$12 sps:$4 sm:$0xff]   ;;  %v431_v17 = vld [vmem:[%s556_s0 + $0x20] ss:$12 sps:$4 sm:$0xff]  }
   0x7   :  { %372 = vmatpush3.bf16.msra.mxu0 %v412_v3  ;;  %403 = vmatprep.subr.bf16.mxu1 %v424_v11  ;;  %v423_v18 = vld [vmem:[%s555_s1 + $0x30] sm:$0xff]   ;;  %v425_v19 = vld [vmem:[%s555_s1 + $0x78] sm:$0xff]   ;;  %v428_v21 = vld [vmem:[%s556_s0] ss:$12 sps:$4 sm:$0xff]  }
   0x8   :  { %373 = vmatprep.subr.bf16.mxu0 %v413_v4  ;;  %405 = vmatprep.mubr.msk.bf16.mxu1 %vm196_vm0, %v427_v14  ;;  %v426_v20 = vld [vmem:[%s555_s1 + $0x38] sm:$0xff]  }
   0x9   :  { %235 = vmatprep.mubr.bf16.mxu0 %v430_v16  ;;  %v432_v22 = vld [vmem:[%s556_s0 + $0x1c] ss:$12 sps:$4 sm:$0xff]   ;;  %v434_v23 = vld [vmem:[%s556_s0 + $0x18] ss:$12 sps:$4 sm:$0xff]  }
   0xa   :  { %404 = vmatpush3.bf16.msra.mxu1 %v424_v11 }
   0xb   :  { %374 = vmatpush3.bf16.msra.mxu0 %v414_v5 }
   0xc   :  { %375 = vmatprep.subr.bf16.mxu0 %v415_v6 }
   0xd   :  { %406 = vmatmul.mubr.msk.bf16.vlgmr.msra.gmra.mrb[0].mxu1 %vm196_vm0, %v431_v17 }
   0xf   :  { %376 = vmatpush3.bf16.msra.mxu0 %v416_v7 }
  0x10   :  { %377 = vmatprep.subr.bf16.mxu0 %v417_v8 }
  0x13   :  { %378 = vmatpush3.bf16.msra.mxu0 %v418_v10 }
  0x14   :  { %379 = vmatprep.subr.bf16.mxu0 %v419_v12 }
  0x17   :  { %380 = vmatpush3.bf16.msra.mxu0 %v420_v13 }
  0x18   :  { %381 = vmatprep.subr.bf16.mxu0 %v422_v15 }
  0x1b   :  { %382 = vmatpush3.bf16.msra.mxu0 %v423_v18 }
  0x1c   :  { %383 = vmatprep.subr.bf16.mxu0 %v425_v19 }
  0x1f   :  { %384 = vmatpush3.bf16.msra.mxu0 %v426_v20 }
  0x22   :  { %236 = vmatmul.mubr.bf16.vlgmr.msra.gmra.mrb[0].mxu0 %v428_v21 }
  0x23   :  { %243 = vmatprep.mubr.bf16.mxu0 %v432_v22 }
  0x2a   :  { %244 = vmatmul.mubr.bf16.gmra.mrb[4].mxu0 %v434_v23 }
  0xe0   :  { %v407_v24 = vpop.f32.mrb[0].mxu1 }
  0xe1   :  { %v286_v25 = vpop.f32.mrb[1].mxu1 }
  0xe2   :  { %v408_v26 = vpop.f32.mrb[2].mxu1 }
  0xe3   :  { %v289_v27 = vpop.f32.mrb[3].mxu1 }
  0xf5   :  { %v385_v28 = vpop.f32.mrb[0].mxu0 }
  0xf6   :  { %v386_v29 = vpop.f32.mrb[1].mxu0 }
  0xf7   :  { %v387_v30 = vadd.f32 %v386_v29, %v385_v28  ;;  %v388_v31 = vpop.f32.mrb[2].mxu0 }
  0xf8   :  { %v389_v32 = vpop.f32.mrb[3].mxu0 }
  0xf9   :  { %v287_v33 = vadd.f32 %v387_v30, %v286_v25  ;;  %v390_v34 = vadd.f32 %v389_v32, %v388_v31 }
  0xfb   :  { %301 = vst [vmem:[%s557_s2] sm:$0xff] %v287_v33  ;;  %v290_v35 = vadd.f32 %v390_v34, %v289_v27  ;;  %305 = vadd.xlane.f32.xlu0 %v287_v33  ;;  %v313_v44 = vmul.f32 %v287_v33, %v287_v33 }
  0xfd   :  { %302 = vst [vmem:[%s557_s2 + $0x8] sm:$0xff] %v290_v35  ;;  %v391_v36 = vpop.f32.mrb[4].mxu0  ;;  %v314_v37 = vmul.f32 %v290_v35, %v290_v35 }
  0xfe   :  { %v392_v38 = vpop.f32.mrb[5].mxu0 }
  0xff   :  { %v393_v39 = vadd.f32 %v392_v38, %v391_v36  ;;  %v394_v40 = vpop.f32.mrb[6].mxu0  ;;  %319 = vadd.xlane.f32.xlu1 %v314_v37  ;;  %307 = vadd.xlane.f32.xlu0 %v290_v35 }
 0x100   :  { %v395_v41 = vpop.f32.mrb[7].mxu0 }
 0x101   :  { %v295_v42 = vadd.f32 %v407_v24, %v393_v39  ;;  %v396_v43 = vadd.f32 %v395_v41, %v394_v40 }
 0x103   :  { %303 = vst [vmem:[%s557_s2 + $0x10] sm:$0xff] %v295_v42  ;;  %v298_v45 = vadd.f32 %v408_v26, %v396_v43  ;;  %309 = vadd.xlane.f32.xlu1 %v295_v42  ;;  %317 = vadd.xlane.f32.xlu0 %v313_v44  ;;  %v315_v46 = vmul.f32 %v295_v42, %v295_v42 }
 0x105   :  { %304 = vst [vmem:[%s557_s2 + $0x18] sm:$0xff] %v298_v45  ;;  %v316_v47 = vmul.f32 %v298_v45, %v298_v45 }
 0x107   :  { %311 = vadd.xlane.f32.xlu1 %v298_v45  ;;  %321 = vadd.xlane.f32.xlu0 %v315_v46 }
 0x10b   :  { %323 = vadd.xlane.f32.xlu1 %v316_v47 }
 0x188   :  { %v306_v48 = vpop.xlane.xlu0 %305 }
 0x18c   :  { %v320_v49 = vpop.xlane.xlu1 %319  ;;  %v308_v50 = vpop.xlane.xlu0 %307 }
 0x18d   :  { %v327_v51 = vsel %vm325_vm1, %v308_v50, %v320_v49 }
 0x18e   :  { %332 = vst.msk [vmem:[%s558_s3 + $0x8] sm:$0xff] %vm330_vm2, %v327_v51 }
 0x190   :  { %v310_v52 = vpop.xlane.xlu1 %309  ;;  %v318_v53 = vpop.xlane.xlu0 %317 }
 0x191   :  { %v326_v54 = vsel %vm325_vm1, %v306_v48, %v318_v53 }
 0x192   :  { %331 = vst.msk [vmem:[%s558_s3] sm:$0xff] %vm330_vm2, %v326_v54 }
 0x194   :  { %v312_v55 = vpop.xlane.xlu1 %311  ;;  %v322_v56 = vpop.xlane.xlu0 %321 }
 0x195   :  { %v328_v57 = vsel %vm325_vm1, %v310_v52, %v322_v56 }
 0x196   :  { %333 = vst.msk [vmem:[%s558_s3 + $0x10] sm:$0xff] %vm330_vm2, %v328_v57 }
 0x198   :  { %v324_v58 = vpop.xlane.xlu1 %323 }
 0x199   :  { %v329_v59 = vsel %vm325_vm1, %v312_v55, %v324_v58 }
 0x19a   :  { %334 = vst.msk [vmem:[%s558_s3 + $0x18] sm:$0xff] %vm330_vm2, %v329_v59 }

</bundles_post_ra>
